<compile_context>
chip_gen: v5e
topology: v5e:2x2
jax: 0.10.0
libtpu: 0.0.40
codegen_flags: <defaults>
</compile_context>

<pallas_src>
import functools

import numpy as np

import jax
import jax.numpy as jnp
from jax.experimental import pallas as pl
from jax.experimental.pallas import tpu as pltpu


# -----------------------------------------------------------------------------
# Trace-time constant: gather table that fuses geo-cyclic padding + im2col +
# batch-fusion + CK zero-padding into a single XLA gather.
# -----------------------------------------------------------------------------
def _patch_gather_indices(B, Cin, H, W, K, CK_pad):
    """idx[ck, b*H*W + h*W + w] = flat index into x.reshape(-1) such that
    x.reshape(-1)[idx] == im2col(geo_cyclic_pad(x)) with rows in (ci, kh, kw)
    order and the batch fused along the lane axis.  Rows >= Cin*K*K gather
    element 0 and are matched by zero weight columns (exact)."""
    pad = K // 2
    Hp, Wp = H + 2 * pad, W + 2 * pad

    # Longitude wrap: xp[..., j] = x[..., colmap[j]]
    colmap = np.concatenate(
        [np.arange(W - pad, W), np.arange(W), np.arange(pad)]).astype(np.int64)

    src_h = np.empty((Hp, Wp), np.int64)
    src_w = np.empty((Hp, Wp), np.int64)
    # Interior latitude rows.
    src_h[pad:pad + H, :] = np.arange(H)[:, None]
    src_w[pad:pad + H, :] = colmap[None, :]
    # Pole rows: flip the pad latitude rows of the wrapped tensor, then roll the
    # (already width-padded) row by W//2 — exactly as GeoCyclicPadding does.
    shift = W // 2
    rolled = colmap[(np.arange(Wp) - shift) % Wp]
    for r in range(pad):
        src_h[r, :] = pad - 1 - r                 # flipped top rows
        src_w[r, :] = rolled
        src_h[pad + H + r, :] = H - 1 - r         # flipped bottom rows
        src_w[pad + H + r, :] = rolled
    plane = src_h * W + src_w                     # flat index within one channel plane

    idx = np.zeros((CK_pad, B * H * W), np.int32)
    for ci in range(Cin):
        for kh in range(K):
            for kw in range(K):
                row = (ci * K + kh) * K + kw
                win = plane[kh:kh + H, kw:kw + W].reshape(-1)     # [H*W]
                for b in range(B):
                    idx[row, b * H * W:(b + 1) * H * W] = (b * Cin + ci) * H * W + win
    return idx


# -----------------------------------------------------------------------------
# Pallas kernel: batch-fused conv-as-matmul + per-sample LayerNorm + SiLU.
# -----------------------------------------------------------------------------
def _clp_kernel(patch_ref, w_ref, b_ref, gamma_ref, beta_ref, o_ref, *,
                eps, batch, hw):
    x = patch_ref[...]                                    # [CKp, B*HW]  bf16
    w = w_ref[...]                                        # [Cout, CKp]  bf16

    # 3x3 conv as one lane-dense MXU matmul (f32 accumulation) + bias broadcast.
    y = jnp.dot(w, x, preferred_element_type=jnp.float32) + b_ref[...]  # [Cout, B*HW]

    gamma = gamma_ref[...]                                # [Cout, HW] f32
    beta = beta_ref[...]                                  # [Cout, HW] f32
    n = y.shape[0] * hw

    # Per-sample LayerNorm over all Cout*H*W elements (two-pass, biased variance,
    # matches nn.LayerNorm([Cout, H, W])), elementwise affine, SiLU.
    for b in range(batch):                                # static unroll (B small)
        ys = y[:, b * hw:(b + 1) * hw]                    # aligned 256-lane slice
        mean = jnp.sum(ys) / n
        yc = ys - mean
        var = jnp.sum(yc * yc) / n
        ya = yc * jax.lax.rsqrt(var + eps) * gamma + beta
        o_ref[b] = ya * jax.nn.sigmoid(ya)                # lane-dense f32 store


def clp_block_forward(x, conv_w, conv_b, ln_w, ln_b, *, kernel_size=3, eps=1e-5):
    """x: [B, Cin, H, W] -> [B, Cout, H, W] (float32)."""
    B, Cin, H, W = x.shape
    Cout = conv_w.shape[0]
    K = kernel_size
    pad = K // 2
    assert pad <= H and W % 2 == 0, "GeoCyclicPadding assumes pad <= H and even W"
    HW = H * W
    CK = Cin * K * K
    CKp = ((CK + 15) // 16) * 16      # pad contraction to bf16 sublane pack (16)

    # ---- glue: one constant gather + tiny parameter re-layouts ----------------
    idx = jnp.asarray(_patch_gather_indices(B, Cin, H, W, K, CKp))   # baked constant
    patches = x.reshape(-1)[idx].astype(jnp.bfloat16)                # [CKp, B*HW]
    w_pad = jnp.pad(conv_w.reshape(Cout, CK),
                    ((0, 0), (0, CKp - CK))).astype(jnp.bfloat16)    # [Cout, CKp]
    b_col = conv_b.reshape(Cout, 1).astype(jnp.float32)              # [Cout, 1]
    gamma = ln_w.reshape(Cout, HW).astype(jnp.float32)               # [Cout, HW]
    beta = ln_b.reshape(Cout, HW).astype(jnp.float32)                # [Cout, HW]

    # ---- hot path: ONE Pallas program (batch fused, no per-step grid overhead) -
    out = pl.pallas_call(
        functools.partial(_clp_kernel, eps=eps, batch=B, hw=HW),
        out_shape=jax.ShapeDtypeStruct((B, Cout, HW), jnp.float32),
        grid_spec=pltpu.PrefetchScalarGridSpec(
            num_scalar_prefetch=0,
            grid=(1,),
            in_specs=[
                pl.BlockSpec((CKp, B * HW), lambda i: (0, 0)),   # patches
                pl.BlockSpec((Cout, CKp), lambda i: (0, 0)),     # conv weight (padded)
                pl.BlockSpec((Cout, 1), lambda i: (0, 0)),       # conv bias
                pl.BlockSpec((Cout, HW), lambda i: (0, 0)),      # LN gamma
                pl.BlockSpec((Cout, HW), lambda i: (0, 0)),      # LN beta
            ],
            out_specs=pl.BlockSpec((B, Cout, HW), lambda i: (0, 0, 0)),
        ),
        compiler_params=pltpu.CompilerParams(
            dimension_semantics=("arbitrary",),
        ),
    )(patches, w_pad, b_col, gamma, beta)

    # Output is already NCHW modulo a free reshape of the last axis.
    return out.reshape(B, Cout, H, W)


# -----------------------------------------------------------------------------
# Pure-JAX reference (independent concat/flip/roll path) for verification.
# -----------------------------------------------------------------------------
def geo_cyclic_pad(x, pad):
    """x: [B, C, H, W] (H = latitude, W = longitude). Mirrors GeoCyclicPadding."""
    _, _, _, W = x.shape
    left = x[..., -pad:]
    right = x[..., :pad]
    xp = jnp.concatenate([left, x, right], axis=-1)
    top = xp[:, :, :pad, :]
    bot = xp[:, :, -pad:, :]
    top_pad = jnp.roll(jnp.flip(top, axis=2), shift=W // 2, axis=3)
    bot_pad = jnp.roll(jnp.flip(bot, axis=2), shift=W // 2, axis=3)
    return jnp.concatenate([top_pad, xp, bot_pad], axis=2)


def clp_block_reference(x, conv_w, conv_b, ln_w, ln_b, *, kernel_size=3, eps=1e-5,
                        conv_dtype=jnp.float32):
    pad = kernel_size // 2
    x_pad = geo_cyclic_pad(x, pad)
    y = jax.lax.conv_general_dilated(
        x_pad.astype(conv_dtype), conv_w.astype(conv_dtype),
        window_strides=(1, 1), padding="VALID",
        dimension_numbers=("NCHW", "OIHW", "NCHW"),
        preferred_element_type=jnp.float32,
    ) + conv_b[None, :, None, None]
    mean = jnp.mean(y, axis=(1, 2, 3), keepdims=True)
    var = jnp.mean((y - mean) ** 2, axis=(1, 2, 3), keepdims=True)
    y = (y - mean) * jax.lax.rsqrt(var + eps)
    y = y * ln_w[None] + ln_b[None]
    return y * jax.nn.sigmoid(y)


# -----------------------------------------------------------------------------
if __name__ == "__main__":
    # Shapes consistent with CLPBlock(input_dim=4, output_dim=8,
    # mesh_size=(16, 16), kernel_size=3), batch=2.
    B, Cin, Cout, H, W, K = 2, 4, 8, 16, 16, 3

    key = jax.random.PRNGKey(0)
    k_w, k_b, k_g, k_be, k_x = jax.random.split(key, 5)

    conv_w = jax.random.normal(k_w, (Cout, Cin, K, K), jnp.float32) * 0.1
    conv_b = jax.random.normal(k_b, (Cout,), jnp.float32) * 0.1
    ln_w = 1.0 + 0.1 * jax.random.normal(k_g, (Cout, H, W), jnp.float32)
    ln_b = 0.1 * jax.random.normal(k_be, (Cout, H, W), jnp.float32)

    x = jax.random.normal(k_x, (B, Cin, H, W), jnp.float32)

    out = jax.jit(clp_block_forward)(x, conv_w, conv_b, ln_w, ln_b)
    out = jax.block_until_ready(out)
    assert out.shape == (B, Cout, H, W), out.shape

    # Reference with the same precision policy (bf16 conv operands, f32 accum):
    # tight comparison — also independently validates the gather-table padding.
    ref_bf16 = clp_block_reference(x, conv_w, conv_b, ln_w, ln_b,
                                   conv_dtype=jnp.bfloat16)
    ref_bf16 = jax.block_until_ready(ref_bf16)
    assert jnp.allclose(out, ref_bf16, rtol=2e-3, atol=2e-3), float(
        jnp.max(jnp.abs(out - ref_bf16)))

    # Full-f32 reference: loose sanity check on the mixed-precision conv.
    ref_f32 = clp_block_reference(x, conv_w, conv_b, ln_w, ln_b,
                                  conv_dtype=jnp.float32)
    ref_f32 = jax.block_until_ready(ref_f32)
    assert jnp.allclose(out, ref_f32, rtol=5e-2, atol=5e-2), float(
        jnp.max(jnp.abs(out - ref_f32)))

    print("KERNEL_OK")
</pallas_src>

<mosaic_0001>
module attributes {stable_mosaic.version = 11 : i64} {
  func.func @_clp_kernel(%arg0: i32, %arg1: memref<48x512xbf16, #tpu.memory_space<vmem>>, %arg2: memref<8x48xbf16, #tpu.memory_space<vmem>>, %arg3: memref<8x1xf32, #tpu.memory_space<vmem>>, %arg4: memref<8x256xf32, #tpu.memory_space<vmem>>, %arg5: memref<8x256xf32, #tpu.memory_space<vmem>>, %arg6: memref<2x8x256xf32, #tpu.memory_space<vmem>>) attributes {dimension_semantics = [#tpu.dimension_semantics<arbitrary>], iteration_bounds = array<i64: 1>, scalar_prefetch = 0 : i64, scratch_operands = 0 : i64, tpu.core_type = #tpu.core_type<tc>, window_params = [{pipeline_mode = #tpu.pipeline_mode<synchronous>, transform_indices = @transform_0, window_bounds = array<i64: 48, 512>}, {pipeline_mode = #tpu.pipeline_mode<synchronous>, transform_indices = @transform_1, window_bounds = array<i64: 8, 48>}, {pipeline_mode = #tpu.pipeline_mode<synchronous>, transform_indices = @transform_2, window_bounds = array<i64: 8, 1>}, {pipeline_mode = #tpu.pipeline_mode<synchronous>, transform_indices = @transform_3, window_bounds = array<i64: 8, 256>}, {pipeline_mode = #tpu.pipeline_mode<synchronous>, transform_indices = @transform_4, window_bounds = array<i64: 8, 256>}, {pipeline_mode = #tpu.pipeline_mode<synchronous>, transform_indices = @transform_5, window_bounds = array<i64: 2, 8, 256>}]} {
    %c0 = arith.constant 0 : index
    %c0_0 = arith.constant 0 : index
    %0 = vector.load %arg1[%c0, %c0_0] : memref<48x512xbf16, #tpu.memory_space<vmem>>, vector<48x512xbf16>
    %c0_1 = arith.constant 0 : index
    %c0_2 = arith.constant 0 : index
    %1 = vector.load %arg2[%c0_1, %c0_2] : memref<8x48xbf16, #tpu.memory_space<vmem>>, vector<8x48xbf16>
    %cst = arith.constant dense<0.000000e+00> : vector<8x512xf32>
    %2 = tpu.matmul %1, %0, %cst {dimension_numbers = #tpu.dot_dimension_numbers<[1], [0], [0], [1], [0, 0, 1, 1], [], []>} : vector<8x48xbf16>, vector<48x512xbf16>, vector<8x512xf32> -> vector<8x512xf32>
    %c0_3 = arith.constant 0 : index
    %c0_4 = arith.constant 0 : index
    %3 = vector.load %arg3[%c0_3, %c0_4] : memref<8x1xf32, #tpu.memory_space<vmem>>, vector<8x1xf32>
    %4 = vector.broadcast %3 : vector<8x1xf32> to vector<8x512xf32>
    %5 = arith.addf %2, %4 : vector<8x512xf32>
    %c0_5 = arith.constant 0 : index
    %c0_6 = arith.constant 0 : index
    %6 = vector.load %arg4[%c0_5, %c0_6] : memref<8x256xf32, #tpu.memory_space<vmem>>, vector<8x256xf32>
    %c0_7 = arith.constant 0 : index
    %c0_8 = arith.constant 0 : index
    %7 = vector.load %arg5[%c0_7, %c0_8] : memref<8x256xf32, #tpu.memory_space<vmem>>, vector<8x256xf32>
    %8 = vector.extract_strided_slice %5 {offsets = [0, 0], sizes = [8, 256], strides = [1, 1]} : vector<8x512xf32> to vector<8x256xf32>
    %9 = vector.shape_cast %8 : vector<8x256xf32> to vector<1x8x256xf32>
    %cst_9 = arith.constant dense<0.000000e+00> : vector<1xf32>
    %10 = vector.multi_reduction <add>, %9, %cst_9 [1, 2] : vector<1x8x256xf32> to vector<1xf32>
    %11 = vector.shape_cast %10 : vector<1xf32> to vector<1x1x1xf32>
    %12 = vector.extract %11[0, 0, 0] : f32 from vector<1x1x1xf32>
    %cst_10 = arith.constant 2.048000e+03 : f32
    %13 = arith.divf %12, %cst_10 : f32
    %14 = vector.broadcast %13 : f32 to vector<8x256xf32>
    %15 = arith.subf %8, %14 : vector<8x256xf32>
    %16 = arith.mulf %15, %15 : vector<8x256xf32>
    %17 = vector.shape_cast %16 : vector<8x256xf32> to vector<1x8x256xf32>
    %cst_11 = arith.constant dense<0.000000e+00> : vector<1xf32>
    %18 = vector.multi_reduction <add>, %17, %cst_11 [1, 2] : vector<1x8x256xf32> to vector<1xf32>
    %19 = vector.shape_cast %18 : vector<1xf32> to vector<1x1x1xf32>
    %20 = vector.extract %19[0, 0, 0] : f32 from vector<1x1x1xf32>
    %cst_12 = arith.constant 2.048000e+03 : f32
    %21 = arith.divf %20, %cst_12 : f32
    %cst_13 = arith.constant 9.99999974E-6 : f32
    %22 = arith.addf %21, %cst_13 : f32
    %23 = math.rsqrt %22 : f32
    %24 = vector.broadcast %23 : f32 to vector<8x256xf32>
    %25 = arith.mulf %15, %24 : vector<8x256xf32>
    %26 = arith.mulf %25, %6 : vector<8x256xf32>
    %27 = arith.addf %26, %7 : vector<8x256xf32>
    %28 = arith.negf %27 : vector<8x256xf32>
    %29 = math.exp %28 : vector<8x256xf32>
    %cst_14 = arith.constant 1.000000e+00 : f32
    %30 = vector.broadcast %cst_14 : f32 to vector<8x256xf32>
    %31 = arith.addf %30, %29 : vector<8x256xf32>
    %32 = arith.divf %30, %31 : vector<8x256xf32>
    %33 = arith.mulf %27, %32 : vector<8x256xf32>
    %c0_15 = arith.constant 0 : index
    %c0_16 = arith.constant 0 : index
    %c0_17 = arith.constant 0 : index
    %34 = vector.load %arg6[%c0_15, %c0_16, %c0_17] : memref<2x8x256xf32, #tpu.memory_space<vmem>>, vector<1x8x256xf32>
    %35 = vector.shape_cast %34 : vector<1x8x256xf32> to vector<8x256xf32>
    %36 = vector.shape_cast %33 : vector<8x256xf32> to vector<1x8x256xf32>
    tpu.vector_store %arg6[%c0_15, %c0_16, %c0_17], %36 {strides = array<i32>} : memref<2x8x256xf32, #tpu.memory_space<vmem>>, vector<1x8x256xf32>,
    %37 = vector.extract_strided_slice %5 {offsets = [0, 256], sizes = [8, 256], strides = [1, 1]} : vector<8x512xf32> to vector<8x256xf32>
    %38 = vector.shape_cast %37 : vector<8x256xf32> to vector<1x8x256xf32>
    %cst_18 = arith.constant dense<0.000000e+00> : vector<1xf32>
    %39 = vector.multi_reduction <add>, %38, %cst_18 [1, 2] : vector<1x8x256xf32> to vector<1xf32>
    %40 = vector.shape_cast %39 : vector<1xf32> to vector<1x1x1xf32>
    %41 = vector.extract %40[0, 0, 0] : f32 from vector<1x1x1xf32>
    %cst_19 = arith.constant 2.048000e+03 : f32
    %42 = arith.divf %41, %cst_19 : f32
    %43 = vector.broadcast %42 : f32 to vector<8x256xf32>
    %44 = arith.subf %37, %43 : vector<8x256xf32>
    %45 = arith.mulf %44, %44 : vector<8x256xf32>
    %46 = vector.shape_cast %45 : vector<8x256xf32> to vector<1x8x256xf32>
    %cst_20 = arith.constant dense<0.000000e+00> : vector<1xf32>
    %47 = vector.multi_reduction <add>, %46, %cst_20 [1, 2] : vector<1x8x256xf32> to vector<1xf32>
    %48 = vector.shape_cast %47 : vector<1xf32> to vector<1x1x1xf32>
    %49 = vector.extract %48[0, 0, 0] : f32 from vector<1x1x1xf32>
    %cst_21 = arith.constant 2.048000e+03 : f32
    %50 = arith.divf %49, %cst_21 : f32
    %cst_22 = arith.constant 9.99999974E-6 : f32
    %51 = arith.addf %50, %cst_22 : f32
    %52 = math.rsqrt %51 : f32
    %53 = vector.broadcast %52 : f32 to vector<8x256xf32>
    %54 = arith.mulf %44, %53 : vector<8x256xf32>
    %55 = arith.mulf %54, %6 : vector<8x256xf32>
    %56 = arith.addf %55, %7 : vector<8x256xf32>
    %57 = arith.negf %56 : vector<8x256xf32>
    %58 = math.exp %57 : vector<8x256xf32>
    %cst_23 = arith.constant 1.000000e+00 : f32
    %59 = vector.broadcast %cst_23 : f32 to vector<8x256xf32>
    %60 = arith.addf %59, %58 : vector<8x256xf32>
    %61 = arith.divf %59, %60 : vector<8x256xf32>
    %62 = arith.mulf %56, %61 : vector<8x256xf32>
    %c1 = arith.constant 1 : index
    %c0_24 = arith.constant 0 : index
    %c0_25 = arith.constant 0 : index
    %63 = vector.load %arg6[%c1, %c0_24, %c0_25] : memref<2x8x256xf32, #tpu.memory_space<vmem>>, vector<1x8x256xf32>
    %64 = vector.shape_cast %63 : vector<1x8x256xf32> to vector<8x256xf32>
    %65 = vector.shape_cast %62 : vector<8x256xf32> to vector<1x8x256xf32>
    tpu.vector_store %arg6[%c1, %c0_24, %c0_25], %65 {strides = array<i32>} : memref<2x8x256xf32, #tpu.memory_space<vmem>>, vector<1x8x256xf32>,
    return
  }
  func.func @transform_0(%arg0: i32) -> (i32, i32) {
    %c0_i32 = arith.constant 0 : i32
    %c0_i32_0 = arith.constant 0 : i32
    %c0_i32_1 = arith.constant 0 : i32
    return %c0_i32, %c0_i32_0 : i32, i32
  }
  func.func @transform_1(%arg0: i32) -> (i32, i32) {
    %c0_i32 = arith.constant 0 : i32
    %c0_i32_0 = arith.constant 0 : i32
    %c0_i32_1 = arith.constant 0 : i32
    return %c0_i32, %c0_i32_0 : i32, i32
  }
  func.func @transform_2(%arg0: i32) -> (i32, i32) {
    %c0_i32 = arith.constant 0 : i32
    %c0_i32_0 = arith.constant 0 : i32
    %c0_i32_1 = arith.constant 0 : i32
    return %c0_i32, %c0_i32_0 : i32, i32
  }
  func.func @transform_3(%arg0: i32) -> (i32, i32) {
    %c0_i32 = arith.constant 0 : i32
    %c0_i32_0 = arith.constant 0 : i32
    %c0_i32_1 = arith.constant 0 : i32
    return %c0_i32, %c0_i32_0 : i32, i32
  }
  func.func @transform_4(%arg0: i32) -> (i32, i32) {
    %c0_i32 = arith.constant 0 : i32
    %c0_i32_0 = arith.constant 0 : i32
    %c0_i32_1 = arith.constant 0 : i32
    return %c0_i32, %c0_i32_0 : i32, i32
  }
  func.func @transform_5(%arg0: i32) -> (i32, i32, i32) {
    %c0_i32 = arith.constant 0 : i32
    %c0_i32_0 = arith.constant 0 : i32
    %c0_i32_1 = arith.constant 0 : i32
    %c0_i32_2 = arith.constant 0 : i32
    return %c0_i32, %c0_i32_0, %c0_i32_1 : i32, i32, i32
  }
}

</mosaic_0001>

<bundles_post_ra>
// kernel: clp_block_forward.1
= control target key start
LH: loop header
LB: loop body
LE: loop exit
PB: predicated region body
PF: predicated region fallthrough
CT: control target
= control target key end

     0   :  { %v484_v3 = vmov 0   ;;  %vm100_vm0 = vcmask 392192   ;;  %v485_v51 = vmov 2048.0   ;;  %s650_s0 = inlined_call_operand.vmem [shape: bf16[48,512], index: 0, kind: input, shape index: {}]   ;;  %s651_s2 = inlined_call_operand.vmem [shape: f32[8,1], index: 2, kind: input, shape index: {}]   ;;  %s652_s1 = inlined_call_operand.vmem [shape: bf16[8,48], index: 1, kind: input, shape index: {}]   ;;  %s653_s3 = inlined_call_operand.vmem [shape: f32[8,256], index: 3, kind: input, shape index: {}]   ;;  %s654_s4 = inlined_call_operand.vmem [shape: f32[8,256], index: 4, kind: input, shape index: {}]   ;;  %s655_s5 = inlined_call_operand.vmem [shape: f32[2,8,256], index: 5, kind: output, shape index: {}]  }
   0x1   :  { %v409_v0 = vld [vmem:[%s650_s0 + $0x40] sm:$0xf]  ;;  %v443_v1 = vld [vmem:[%s650_s0 + $0x4c] sm:$0xf0]  ;;  %v441_v2 = vld [vmem:[%s650_s0 + $0x44] sm:$0xf]  ;;  %461 = vset.pattern.permute.xlu0 %v484_v3  ;;  %462 = vrcp.f32 %v485_v51 }
   0x2   :  { %v410_v4 = vor.u32 %v443_v1, %v409_v0  ;;  %v411_v5 = vld [vmem:[%s650_s0 + $0x50] sm:$0xf0]  ;;  %v417_v6 = vld [vmem:[%s650_s0 + $0x48] sm:$0xf]  ;;  %v444_v7 = vld [vmem:[%s650_s0 + $0x54] sm:$0xf0] }
   0x3   :  { %v414_v8 = vor.u32 %v441_v2, %v411_v5  ;;  %v418_v9 = vor.u32 %v444_v7, %v417_v6  ;;  %v442_v10 = vld [vmem:[%s650_s0 + $0x4c] sm:$0xf]  ;;  %v419_v11 = vld [vmem:[%s650_s0 + $0x58] sm:$0xf0]  ;;  %v393_v12 = vld [vmem:[%s650_s0 + $0x20] sm:$0xf] }
   0x4   :  { %109 = vmatpush.bf16.msra.mxu0 %v410_v4  ;;  %v422_v13 = vor.u32 %v442_v10, %v419_v11  ;;  %v439_v14 = vld [vmem:[%s650_s0 + $0x2c] sm:$0xf0]  ;;  %v437_v15 = vld [vmem:[%s650_s0 + $0x24] sm:$0xf]  ;;  %v395_v16 = vld [vmem:[%s650_s0 + $0x30] sm:$0xf0] }
   0x5   :  { %122 = vmatpush.bf16.msra.mxu1 %v414_v8  ;;  %135 = vmatpush.bf16.msra.mxu2 %v418_v9  ;;  %v394_v17 = vor.u32 %v439_v14, %v393_v12  ;;  %v398_v18 = vor.u32 %v437_v15, %v395_v16  ;;  %v401_v19 = vld [vmem:[%s650_s0 + $0x28] sm:$0xf]  ;;  %v440_v20 = vld [vmem:[%s650_s0 + $0x34] sm:$0xf0]  ;;  %v438_v21 = vld [vmem:[%s650_s0 + $0x2c] sm:$0xf] }
   0x6   :  { %148 = vmatpush.bf16.msra.mxu3 %v422_v13  ;;  %v402_v22 = vor.u32 %v440_v20, %v401_v19  ;;  %v403_v23 = vld [vmem:[%s650_s0 + $0x38] sm:$0xf0]  ;;  %v377_v24 = vld [vmem:[%s650_s0] sm:$0xf]  ;;  %v435_v25 = vld [vmem:[%s650_s0 + $0xc] sm:$0xf0] }
   0x7   :  { %v406_v26 = vor.u32 %v438_v21, %v403_v23  ;;  %v433_v27 = vld [vmem:[%s650_s0 + $0x4] sm:$0xf]  ;;  %v379_v28 = vld [vmem:[%s650_s0 + $0x10] sm:$0xf0]  ;;  %v385_v29 = vld [vmem:[%s650_s0 + $0x8] sm:$0xf]  ;;  %v378_v30 = vor.u32 %v435_v25, %v377_v24  ;;  %v463_v52 = vpop.eup %462 }
   0x8   :  { %110 = vmatpush.bf16.msra.mxu0 %v394_v17  ;;  %v436_v31 = vld [vmem:[%s650_s0 + $0x14] sm:$0xf0]  ;;  %v434_v32 = vld [vmem:[%s650_s0 + $0xc] sm:$0xf]  ;;  %v387_v33 = vld [vmem:[%s650_s0 + $0x18] sm:$0xf0]  ;;  %v382_v34 = vor.u32 %v433_v27, %v379_v28  ;;  %vm175_vm1 = vweird.f32 %v463_v52 }
   0x9   :  { %123 = vmatpush.bf16.msra.mxu1 %v398_v18  ;;  %136 = vmatpush.bf16.msra.mxu2 %v402_v22  ;;  %v386_v35 = vor.u32 %v436_v31, %v385_v29  ;;  %v34_v36 = vld [vmem:[%s651_s2] sm:$0xff]  ;;  %v390_v37 = vor.u32 %v434_v32, %v387_v33  ;;  %v171_v53 = vmul.f32 2048.0, %v463_v52  ;;  %v606_v33 = vld [vmem:[%s653_s3 + $0x8] sm:$0xff] }
   0xa   :  { %149 = vmatpush.bf16.msra.mxu3 %v406_v26  ;;  %37 = vperm.xlu0 %461, %v34_v36   ;;  %v33_v38 = vld [vmem:[%s652_s1] sm:$0xf] }
   0xb   :  { %v172_v54 = vsub.f32 1.0, %v171_v53  ;;  %v601_v32 = vld [vmem:[%s653_s3] sm:$0xff] }
   0xc   :  { %111 = vmatpush.bf16.msra.mxu0 %v378_v30 }
   0xd   :  { %124 = vmatpush.bf16.msra.mxu1 %v382_v34  ;;  %137 = vmatpush.bf16.msra.mxu2 %v386_v35  ;;  %v173_v58 = vmul.f32 %v463_v52, %v172_v54 }
   0xe   :  { %150 = vmatpush.bf16.msra.mxu3 %v390_v37  ;;  %v612_v37 = vld [vmem:[%s654_s4] sm:$0xff] }
   0xf   :  { %423 = vmatmul.msk.bf16.vlgmr.msra.gmra.mxu0 %vm100_vm0, %v33_v38  ;;  %v174_v61 = vadd.f32 %v463_v52, %v173_v58 }
  0x10   :  { %424 = vmatmul.msk.bf16.vlgmr.msra.gmra.mxu1 %vm100_vm0, %v33_v38  ;;  %425 = vmatmul.msk.bf16.vlgmr.msra.gmra.mxu2 %vm100_vm0, %v33_v38 }
  0x11   :  { %426 = vmatmul.msk.bf16.vlgmr.msra.gmra.mxu3 %vm100_vm0, %v33_v38  ;;  %v176_v0 = vsel %vm175_vm1, %v463_v52, %v174_v61  ;;  %v617_v38 = vld [vmem:[%s654_s4 + $0x8] sm:$0xff] }
  0x7c   :  { %v38_v39 = vpop.permute.xlu0 %37 }
  0x8c   :  { %v113_v40 = vpop.f32.mrf.mxu0 }
  0x8d   :  { %v114_v41 = vadd.f32 %v113_v40, %v38_v39  ;;  %v126_v42 = vpop.f32.mrf.mxu1 }
  0x8e   :  { %v127_v43 = vadd.f32 %v126_v42, %v38_v39 }
  0x90   :  { %v160_v44 = vadd.f32 %v127_v43, %v114_v41 }
  0x92   :  { %161 = vadd.xlane.f32.xlu0 %v160_v44 }
  0x93   :  { %v139_v45 = vpop.f32.mrf.mxu2 }
  0x94   :  { %v152_v46 = vpop.f32.mrf.mxu3  ;;  %v115_v47 = vpop.f32.mrf.mxu0  ;;  %v140_v7 = vadd.f32 %v139_v45, %v38_v39 }
  0x95   :  { %v128_v48 = vpop.f32.mrf.mxu1  ;;  %v153_v8 = vadd.f32 %v152_v46, %v38_v39 }
  0x97   :  { %v265_v9 = vadd.f32 %v153_v8, %v140_v7 }
  0x9b   :  { %v141_v49 = vpop.f32.mrf.mxu2 }
  0x9c   :  { %v154_v50 = vpop.f32.mrf.mxu3 }
 0x105   :  { %v162_v55 = vpop.xlane.xlu0 %161 }
 0x106   :  { %v163_v56 = vrot.slane %v162_v55, 4 }
 0x108   :  { %v164_v57 = vadd.f32 %v163_v56, %v162_v55 }
 0x10a   :  { %v165_v59 = vrot.slane %v164_v57, 2 }
 0x10c   :  { %v166_v60 = vadd.f32 %v165_v59, %v164_v57 }
 0x10e   :  { %v167_v62 = vrot.slane %v166_v60, 1 }
 0x110   :  { %v168_v63 = vadd.f32 %v167_v62, %v166_v60 }
 0x112   :  { %445 = vpush %v168_v63 }
 0x113   :  { %447 = vpush %v176_v0 }
 0x143   :  { %s446_s0 = spop %445 }
 0x144   :  { %s594_s1 = spop %447 }
 0x145   :  { %s178_s2 = smul.f32 %s594_s1, %s446_s0 }
 0x147   :  { %v179_v1 = vstv %s178_s2 }
 0x148   :  { %v180_v2 = vsub.f32 %v114_v41, %v179_v1  ;;  %v181_v3 = vsub.f32 %v127_v43, %v179_v1 }
 0x14a   :  { %v182_v4 = vmul.f32 %v180_v2, %v180_v2  ;;  %v183_v5 = vmul.f32 %v181_v3, %v181_v3 }
 0x14c   :  { %v184_v6 = vadd.f32 %v183_v5, %v182_v4 }
 0x14e   :  { %185 = vadd.xlane.f32.xlu1 %v184_v6 }
 0x156   :  { %266 = vadd.xlane.f32.xlu1 %v265_v9 }
 0x1c1   :  { %v186_v10 = vpop.xlane.xlu1 %185 }
 0x1c2   :  { %v187_v11 = vrot.slane %v186_v10, 4 }
 0x1c4   :  { %v188_v12 = vadd.f32 %v187_v11, %v186_v10 }
 0x1c6   :  { %v189_v13 = vrot.slane %v188_v12, 2 }
 0x1c8   :  { %v190_v14 = vadd.f32 %v189_v13, %v188_v12 }
 0x1c9   :  { %v267_v17 = vpop.xlane.xlu1 %266 }
 0x1ca   :  { %v191_v15 = vrot.slane %v190_v14, 1  ;;  %v268_v18 = vrot.slane %v267_v17, 4 }
 0x1cc   :  { %v192_v16 = vadd.f32 %v191_v15, %v190_v14  ;;  %v269_v20 = vadd.f32 %v268_v18, %v267_v17 }
 0x1ce   :  { %449 = vpush %v192_v16  ;;  %v270_v21 = vrot.slane %v269_v20, 2 }
 0x1d0   :  { %v271_v24 = vadd.f32 %v270_v21, %v269_v20 }
 0x1d2   :  { %v272_v28 = vrot.slane %v271_v24, 1 }
 0x1d4   :  { %v273_v31 = vadd.f32 %v272_v28, %v271_v24 }
 0x1ff   :  { %s450_s20 = spop %449 }
 0x200   :  { %s202_s21 = smul.f32 %s450_s20, %s594_s1 }
 0x202   :  { %s203_s22 = sadd.f32 1e-05, %s202_s21 }
 0x204   :  { %v204_v19 = vstv %s203_s22 }
 0x205   :  { %464 = vrsqrt.f32 %v204_v19  ;;  %vm211_vm3 = vweird.f32 %v204_v19 }
 0x20b   :  { %v465_v22 = vpop.eup %464 }
 0x20c   :  { %v206_v23 = vmul.f32 %v465_v22, %v204_v19  ;;  %vm212_vm2 = vweird.f32 %v465_v22 }
 0x20d   :  { %vm213_vm4 = vmor %vm211_vm3, %vm212_vm2 }
 0x20e   :  { %v207_v25 = vmul.f32 %v465_v22, %v206_v23 }
 0x210   :  { %v208_v26 = vmul.f32 0.5, %v207_v25 }
 0x212   :  { %v209_v27 = vsub.f32 1.5, %v208_v26 }
 0x214   :  { %v210_v29 = vmul.f32 %v465_v22, %v209_v27 }
 0x216   :  { %v214_v30 = vsel %vm213_vm4, %v465_v22, %v210_v29 }
 0x217   :  { %451 = vpush %v214_v30 }
 0x218   :  { %453 = vpush %v273_v31 }
 0x248   :  { %s452_s23 = spop %451 }
 0x249   :  { %v216_v34 = vstv %s452_s23  ;;  %s454_s28 = spop %453 }
 0x24a   :  { %v217_v35 = vmul.f32 %v216_v34, %v180_v2  ;;  %v218_v36 = vmul.f32 %v216_v34, %v181_v3  ;;  %s283_s29 = smul.f32 %s454_s28, %s594_s1 }
 0x24c   :  { %v219_v39 = vmul.f32 %v217_v35, %v601_v32  ;;  %v220_v40 = vmul.f32 %v218_v36, %v606_v33  ;;  %v284_v41 = vstv %s283_s29 }
 0x24d   :  { %v621_v42 = vsub.f32 %v140_v7, %v284_v41  ;;  %v623_v43 = vsub.f32 %v153_v8, %v284_v41 }
 0x24e   :  { %v221_v44 = vadd.f32 %v219_v39, %v612_v37  ;;  %v222_v45 = vadd.f32 %v220_v40, %v617_v38 }
 0x24f   :  { %v287_v46 = vmul.f32 %v621_v42, %v621_v42  ;;  %v288_v47 = vmul.f32 %v623_v43, %v623_v43 }
 0x250   :  { %v427_v48 = vmul.f32 -1.442695, %v221_v44  ;;  %v428_v49 = vmul.f32 -1.442695, %v222_v45 }
 0x251   :  { %v289_v50 = vadd.f32 %v288_v47, %v287_v46 }
 0x252   :  { %466 = vpow2.f32 %v427_v48 }
 0x253   :  { %468 = vpow2.f32 %v428_v49  ;;  %290 = vadd.xlane.f32.xlu2 %v289_v50 }
 0x258   :  { %v467_v51 = vpop.eup %466 }
 0x259   :  { %v469_v52 = vpop.eup %468  ;;  %v229_v53 = vadd.f32 1.0, %v467_v51 }
 0x25a   :  { %v230_v54 = vadd.f32 1.0, %v469_v52 }
 0x25b   :  { %470 = vrcp.f32 %v229_v53  ;;  %v242_v60 = vand.u32 2147483648, %v229_v53  ;;  %v240_v63 = vand.u32 2147483647, %v229_v53  ;;  %vm236_vm7 = vweird.f32 %v229_v53 }
 0x25c   :  { %472 = vrcp.f32 %v230_v54  ;;  %v257_v0 = vand.u32 2147483648, %v230_v54  ;;  %v255_v2 = vand.u32 2147483647, %v230_v54  ;;  %vm251_vm9 = vweird.f32 %v230_v54 }
 0x25d   :  { %v243_v4 = vor.u32 1.1754944e-38, %v242_v60  ;;  %vm241_vm10 = vcmp.eq.f32.partialorder %v240_v63, 8.507059e+37 }
 0x25e   :  { %v258_v7 = vor.u32 1.1754944e-38, %v257_v0  ;;  %vm256_vm12 = vcmp.eq.f32.partialorder %v255_v2, 8.507059e+37 }
 0x261   :  { %v471_v55 = vpop.eup %470 }
 0x262   :  { %v473_v56 = vpop.eup %472  ;;  %v232_v57 = vmul.f32 %v471_v55, %v229_v53  ;;  %vm237_vm5 = vweird.f32 %v471_v55 }
 0x263   :  { %v247_v58 = vmul.f32 %v473_v56, %v230_v54  ;;  %vm252_vm6 = vweird.f32 %v473_v56  ;;  %vm238_vm8 = vmor %vm236_vm7, %vm237_vm5 }
 0x264   :  { %v233_v59 = vsub.f32 1.0, %v232_v57  ;;  %vm253_vm11 = vmor %vm251_vm9, %vm252_vm6 }
 0x265   :  { %v248_v61 = vsub.f32 1.0, %v247_v58 }
 0x266   :  { %v234_v62 = vmul.f32 %v471_v55, %v233_v59 }
 0x267   :  { %v249_v1 = vmul.f32 %v473_v56, %v248_v61 }
 0x268   :  { %v235_v3 = vadd.f32 %v471_v55, %v234_v62 }
 0x269   :  { %v250_v5 = vadd.f32 %v473_v56, %v249_v1 }
 0x26a   :  { %v239_v6 = vsel %vm238_vm8, %v471_v55, %v235_v3 }
 0x26b   :  { %v244_v8 = vsel %vm241_vm10, %v243_v4, %v239_v6  ;;  %v254_v9 = vsel %vm253_vm11, %v473_v56, %v250_v5 }
 0x26c   :  { %v259_v10 = vsel %vm256_vm12, %v258_v7, %v254_v9  ;;  %v261_v11 = vmul.f32 %v244_v8, %v221_v44 }
 0x26d   :  { %v262_v12 = vmul.f32 %v259_v10, %v222_v45 }
 0x26e   :  { %263 = vst [vmem:[%s655_s5] sm:$0xff] %v261_v11 }
 0x26f   :  { %264 = vst [vmem:[%s655_s5 + $0x8] sm:$0xff] %v262_v12 }
 0x2c6   :  { %v291_v13 = vpop.xlane.xlu2 %290 }
 0x2c7   :  { %v292_v14 = vrot.slane %v291_v13, 4 }
 0x2c9   :  { %v293_v15 = vadd.f32 %v292_v14, %v291_v13 }
 0x2cb   :  { %v294_v16 = vrot.slane %v293_v15, 2 }
 0x2cd   :  { %v295_v17 = vadd.f32 %v294_v16, %v293_v15 }
 0x2cf   :  { %v296_v18 = vrot.slane %v295_v17, 1 }
 0x2d1   :  { %v297_v19 = vadd.f32 %v296_v18, %v295_v17 }
 0x2d3   :  { %455 = vpush %v297_v19 }
 0x304   :  { %s456_s11 = spop %455 }
 0x305   :  { %s307_s12 = smul.f32 %s456_s11, %s594_s1 }
 0x307   :  { %s308_s13 = sadd.f32 1e-05, %s307_s12 }
 0x309   :  { %v309_v20 = vstv %s308_s13 }
 0x30a   :  { %474 = vrsqrt.f32 %v309_v20  ;;  %vm316_vm14 = vweird.f32 %v309_v20 }
 0x310   :  { %v475_v21 = vpop.eup %474 }
 0x311   :  { %v311_v22 = vmul.f32 %v475_v21, %v309_v20  ;;  %vm317_vm13 = vweird.f32 %v475_v21 }
 0x312   :  { %vm318_vm15 = vmor %vm316_vm14, %vm317_vm13 }
 0x313   :  { %v312_v23 = vmul.f32 %v475_v21, %v311_v22 }
 0x315   :  { %v313_v24 = vmul.f32 0.5, %v312_v23 }
 0x317   :  { %v314_v25 = vsub.f32 1.5, %v313_v24 }
 0x319   :  { %v315_v26 = vmul.f32 %v475_v21, %v314_v25 }
 0x31b   :  { %v319_v27 = vsel %vm318_vm15, %v475_v21, %v315_v26 }
 0x31c   :  { %457 = vpush %v319_v27 }
 0x34d   :  { %s458_s14 = spop %457 }
 0x34e   :  { %v321_v28 = vstv %s458_s14 }
 0x34f   :  { %v322_v29 = vmul.f32 %v321_v28, %v621_v42  ;;  %v323_v30 = vmul.f32 %v321_v28, %v623_v43 }
 0x351   :  { %v324_v31 = vmul.f32 %v322_v29, %v601_v32  ;;  %v325_v34 = vmul.f32 %v323_v30, %v606_v33 }
 0x353   :  { %v326_v35 = vadd.f32 %v324_v31, %v612_v37  ;;  %v327_v36 = vadd.f32 %v325_v34, %v617_v38 }
 0x355   :  { %v429_v39 = vmul.f32 -1.442695, %v326_v35  ;;  %v430_v40 = vmul.f32 -1.442695, %v327_v36 }
 0x357   :  { %476 = vpow2.f32 %v429_v39 }
 0x358   :  { %478 = vpow2.f32 %v430_v40 }
 0x35d   :  { %v477_v41 = vpop.eup %476 }
 0x35e   :  { %v479_v44 = vpop.eup %478  ;;  %v334_v45 = vadd.f32 1.0, %v477_v41 }
 0x35f   :  { %v335_v46 = vadd.f32 1.0, %v479_v44 }
 0x360   :  { %480 = vrcp.f32 %v334_v45  ;;  %v347_v33 = vand.u32 2147483648, %v334_v45  ;;  %v345_v38 = vand.u32 2147483647, %v334_v45  ;;  %vm341_vm2 = vweird.f32 %v334_v45 }
 0x361   :  { %482 = vrcp.f32 %v335_v46  ;;  %v362_v50 = vand.u32 2147483648, %v335_v46  ;;  %v360_v52 = vand.u32 2147483647, %v335_v46  ;;  %vm356_vm4 = vweird.f32 %v335_v46 }
 0x362   :  { %v348_v54 = vor.u32 1.1754944e-38, %v347_v33  ;;  %vm346_vm5 = vcmp.eq.f32.partialorder %v345_v38, 8.507059e+37 }
 0x363   :  { %v363_v57 = vor.u32 1.1754944e-38, %v362_v50  ;;  %vm361_vm7 = vcmp.eq.f32.partialorder %v360_v52, 8.507059e+37 }
 0x366   :  { %v481_v42 = vpop.eup %480 }
 0x367   :  { %v483_v43 = vpop.eup %482  ;;  %v337_v47 = vmul.f32 %v481_v42, %v334_v45  ;;  %vm342_vm0 = vweird.f32 %v481_v42 }
 0x368   :  { %v352_v32 = vmul.f32 %v483_v43, %v335_v46  ;;  %vm357_vm1 = vweird.f32 %v483_v43  ;;  %vm343_vm3 = vmor %vm341_vm2, %vm342_vm0 }
 0x369   :  { %v338_v48 = vsub.f32 1.0, %v337_v47  ;;  %vm358_vm6 = vmor %vm356_vm4, %vm357_vm1 }
 0x36a   :  { %v353_v49 = vsub.f32 1.0, %v352_v32 }
 0x36b   :  { %v339_v37 = vmul.f32 %v481_v42, %v338_v48 }
 0x36c   :  { %v354_v51 = vmul.f32 %v483_v43, %v353_v49 }
 0x36d   :  { %v340_v53 = vadd.f32 %v481_v42, %v339_v37 }
 0x36e   :  { %v355_v55 = vadd.f32 %v483_v43, %v354_v51 }
 0x36f   :  { %v344_v56 = vsel %vm343_vm3, %v481_v42, %v340_v53 }
 0x370   :  { %v349_v58 = vsel %vm346_vm5, %v348_v54, %v344_v56  ;;  %v359_v59 = vsel %vm358_vm6, %v483_v43, %v355_v55 }
 0x371   :  { %v364_v60 = vsel %vm361_vm7, %v363_v57, %v359_v59  ;;  %v366_v61 = vmul.f32 %v349_v58, %v326_v35 }
 0x372   :  { %v367_v62 = vmul.f32 %v364_v60, %v327_v36 }
 0x373   :  { %431 = vst [vmem:[%s655_s5 + $0x10] sm:$0xff] %v366_v61 }
 0x374   :  { %432 = vst [vmem:[%s655_s5 + $0x18] sm:$0xff] %v367_v62 }

</bundles_post_ra>
